<compile_context>
chip_gen: v7x
topology: tpu7x:2x2x1
jax: 0.10.0
libtpu: 0.0.40
codegen_flags: <defaults>
</compile_context>

<pallas_src>
import jax
import jax.numpy as jnp
from jax.experimental import pallas as pl
from jax.experimental.pallas import tpu as pltpu

TARGET_BIT_STRING_LEN = 8
NUM_HID = 32
LANES = 128  # TPU lane width; used to pad input/output to lane-dense blocks


def gflownet_kernel(x_ref, w1_ref, b1_ref, w2_ref, b2_ref, o_ref):
    # x_ref:  (TB, 128)  bits in lanes [0, L), zeros elsewhere (also the mask)
    # w1_ref: (128, H)   rows [L, 128) are zero
    # b1_ref: (1, H)
    # w2_ref: (H, 128)   cols [L+1, 128) are zero
    # b2_ref: (1, 128)   entries [L+1, 128) are zero
    # o_ref:  (TB, 128)  lane-dense output slab; cols [L+1, 128) are padding
    x = x_ref[...]
    h = jnp.dot(x, w1_ref[...], preferred_element_type=jnp.float32) + b1_ref[...]
    h = jnp.maximum(h, 0.01 * h)  # LeakyReLU, PyTorch default slope 0.01
    pf = jnp.dot(h, w2_ref[...], preferred_element_type=jnp.float32) + b2_ref[...]
    # Padded lanes of x are 0.0, so only the first L logits can ever be masked.
    o_ref[...] = jnp.where(x == 1.0, jnp.float32(-100.0), pf)


def init_params(key, num_hid=NUM_HID, length=TARGET_BIT_STRING_LEN):
    """Deterministic init mimicking torch.nn.Linear default (uniform +/- 1/sqrt(fan_in))."""
    k1, k2, k3, k4 = jax.random.split(key, 4)
    bound1 = 1.0 / float(length) ** 0.5
    bound2 = 1.0 / float(num_hid) ** 0.5
    w1 = jax.random.uniform(k1, (length, num_hid), jnp.float32, -bound1, bound1)
    b1 = jax.random.uniform(k2, (num_hid,), jnp.float32, -bound1, bound1)
    w2 = jax.random.uniform(k3, (num_hid, length + 1), jnp.float32, -bound2, bound2)
    b2 = jax.random.uniform(k4, (length + 1,), jnp.float32, -bound2, bound2)
    logZ = jnp.ones((1,), jnp.float32)  # parity with nn.Parameter; unused in forward
    return {"w1": w1, "b1": b1, "w2": w2, "b2": b2, "logZ": logZ}


def _round_up(n, m):
    return ((n + m - 1) // m) * m


def _pad_params(params):
    """Zero-pad weights so both matmuls read/write 128-lane-dense blocks."""
    L = TARGET_BIT_STRING_LEN
    w1 = params["w1"].astype(jnp.float32)
    w2 = params["w2"].astype(jnp.float32)
    h = w1.shape[1]
    w1p = jnp.zeros((LANES, h), jnp.float32).at[:L, :].set(w1)
    b1p = params["b1"].astype(jnp.float32).reshape(1, h)
    w2p = jnp.zeros((h, LANES), jnp.float32).at[:, : L + 1].set(w2)
    b2p = jnp.zeros((1, LANES), jnp.float32).at[0, : L + 1].set(
        params["b2"].astype(jnp.float32)
    )
    return w1p, b1p, w2p, b2p


def gflownet_forward_batched(xs, params, *, tb=512):
    """Batched forward: xs (B, L) float bit-strings -> (B, L+1) logits."""
    L = TARGET_BIT_STRING_LEN
    xs = jnp.asarray(xs, jnp.float32)
    B, Lx = xs.shape
    if Lx != L:
        raise AssertionError("Input tensor of incorrect length")

    w1p, b1p, w2p, b2p = _pad_params(params)

    tb = min(tb, _round_up(B, 8))       # row tile; multiple of 8 sublanes
    Bp = _round_up(B, tb)               # pad batch to a whole number of tiles
    xpad = jnp.zeros((Bp, LANES), jnp.float32).at[:B, :L].set(xs)

    out = pl.pallas_call(
        gflownet_kernel,
        out_shape=jax.ShapeDtypeStruct((Bp, LANES), jnp.float32),
        grid=(Bp // tb,),
        in_specs=[
            pl.BlockSpec((tb, LANES), lambda i: (i, 0)),   # x tiles over batch
            pl.BlockSpec(w1p.shape, lambda i: (0, 0)),     # weights: resident
            pl.BlockSpec(b1p.shape, lambda i: (0, 0)),
            pl.BlockSpec(w2p.shape, lambda i: (0, 0)),
            pl.BlockSpec(b2p.shape, lambda i: (0, 0)),
        ],
        out_specs=pl.BlockSpec((tb, LANES), lambda i: (i, 0)),
        compiler_params=pltpu.CompilerParams(
            dimension_semantics=("parallel",),
        ),
    )(xpad, w1p, b1p, w2p, b2p)

    return out[:B, : L + 1]


def gflownet_forward(x, params):
    """Single-vector forward matching the PyTorch module: x (L,) -> (L+1,)."""
    if x.shape[0] != TARGET_BIT_STRING_LEN:
        raise AssertionError("Input tensor of incorrect length")
    # B=1 path: fixed pallas_call overhead dominates here by design; use the
    # batched entry point for throughput.
    return gflownet_forward_batched(x.reshape(1, -1), params, tb=8)[0]


def gflownet_reference_batched(xs, params):
    """Pure-JAX reference for correctness check."""
    xs = jnp.asarray(xs, jnp.float32)
    h = xs @ params["w1"] + params["b1"]
    h = jnp.where(h >= 0.0, h, 0.01 * h)
    pf = h @ params["w2"] + params["b2"]
    mask = jnp.concatenate(
        [xs == 1.0, jnp.zeros((xs.shape[0], 1), jnp.bool_)], axis=-1
    )
    return jnp.where(mask, -100.0, pf)


if __name__ == "__main__":
    key = jax.random.PRNGKey(0)
    k_param, k_x, k_xs = jax.random.split(key, 3)
    params = init_params(k_param)

    # 1) Single-vector forward (exact PyTorch module semantics).
    x = jax.random.bernoulli(
        k_x, p=0.5, shape=(TARGET_BIT_STRING_LEN,)
    ).astype(jnp.float32)
    out1 = jax.block_until_ready(gflownet_forward(x, params))
    ref1 = gflownet_reference_batched(x[None, :], params)[0]
    assert out1.shape == (TARGET_BIT_STRING_LEN + 1,)
    assert jnp.allclose(out1, ref1, atol=1e-5, rtol=1e-5)

    # 2) Batched forward: grid over batch, TB=512 rows per step, 2 grid steps.
    B = 1024
    xs = jax.random.bernoulli(
        k_xs, p=0.5, shape=(B, TARGET_BIT_STRING_LEN)
    ).astype(jnp.float32)
    out2 = jax.block_until_ready(gflownet_forward_batched(xs, params, tb=512))
    ref2 = gflownet_reference_batched(xs, params)
    assert out2.shape == (B, TARGET_BIT_STRING_LEN + 1)
    assert jnp.allclose(out2, ref2, atol=1e-5, rtol=1e-5)

    print("KERNEL_OK")
</pallas_src>

<mosaic_0001>
module attributes {stable_mosaic.version = 11 : i64} {
  func.func @gflownet_kernel(%arg0: i32, %arg1: memref<8x128xf32, #tpu.memory_space<vmem>>, %arg2: memref<128x32xf32, #tpu.memory_space<vmem>>, %arg3: memref<1x32xf32, #tpu.memory_space<vmem>>, %arg4: memref<32x128xf32, #tpu.memory_space<vmem>>, %arg5: memref<1x128xf32, #tpu.memory_space<vmem>>, %arg6: memref<8x128xf32, #tpu.memory_space<vmem>>) attributes {dimension_semantics = [#tpu.dimension_semantics<parallel>], iteration_bounds = array<i64: 1>, scalar_prefetch = 0 : i64, scratch_operands = 0 : i64, tpu.core_type = #tpu.core_type<tc>, window_params = [{transform_indices = @transform_0, window_bounds = array<i64: 8, 128>}, {pipeline_mode = #tpu.pipeline_mode<synchronous>, transform_indices = @transform_1, window_bounds = array<i64: 128, 32>}, {pipeline_mode = #tpu.pipeline_mode<synchronous>, transform_indices = @transform_2, window_bounds = array<i64: 1, 32>}, {pipeline_mode = #tpu.pipeline_mode<synchronous>, transform_indices = @transform_3, window_bounds = array<i64: 32, 128>}, {pipeline_mode = #tpu.pipeline_mode<synchronous>, transform_indices = @transform_4, window_bounds = array<i64: 1, 128>}, {transform_indices = @transform_5, window_bounds = array<i64: 8, 128>}]} {
    %c0 = arith.constant 0 : index
    %c0_0 = arith.constant 0 : index
    %0 = vector.load %arg1[%c0, %c0_0] : memref<8x128xf32, #tpu.memory_space<vmem>>, vector<8x128xf32>
    %c0_1 = arith.constant 0 : index
    %c0_2 = arith.constant 0 : index
    %1 = vector.load %arg2[%c0_1, %c0_2] : memref<128x32xf32, #tpu.memory_space<vmem>>, vector<128x32xf32>
    %cst = arith.constant dense<0.000000e+00> : vector<8x32xf32>
    %2 = tpu.matmul %0, %1, %cst {dimension_numbers = #tpu.dot_dimension_numbers<[1], [0], [0], [1], [0, 0, 1, 1], [], []>} : vector<8x128xf32>, vector<128x32xf32>, vector<8x32xf32> -> vector<8x32xf32>
    %c0_3 = arith.constant 0 : index
    %c0_4 = arith.constant 0 : index
    %3 = vector.load %arg3[%c0_3, %c0_4] : memref<1x32xf32, #tpu.memory_space<vmem>>, vector<1x32xf32>
    %4 = vector.broadcast %3 : vector<1x32xf32> to vector<8x32xf32>
    %5 = arith.addf %2, %4 : vector<8x32xf32>
    %cst_5 = arith.constant 0.00999999977 : f32
    %6 = vector.broadcast %cst_5 : f32 to vector<8x32xf32>
    %7 = arith.mulf %6, %5 : vector<8x32xf32>
    %8 = arith.maximumf %5, %7 : vector<8x32xf32>
    %c0_6 = arith.constant 0 : index
    %c0_7 = arith.constant 0 : index
    %9 = vector.load %arg4[%c0_6, %c0_7] : memref<32x128xf32, #tpu.memory_space<vmem>>, vector<32x128xf32>
    %cst_8 = arith.constant dense<0.000000e+00> : vector<8x128xf32>
    %10 = tpu.matmul %8, %9, %cst_8 {dimension_numbers = #tpu.dot_dimension_numbers<[1], [0], [0], [1], [0, 0, 1, 1], [], []>} : vector<8x32xf32>, vector<32x128xf32>, vector<8x128xf32> -> vector<8x128xf32>
    %c0_9 = arith.constant 0 : index
    %c0_10 = arith.constant 0 : index
    %11 = vector.load %arg5[%c0_9, %c0_10] : memref<1x128xf32, #tpu.memory_space<vmem>>, vector<1x128xf32>
    %12 = vector.broadcast %11 : vector<1x128xf32> to vector<8x128xf32>
    %13 = arith.addf %10, %12 : vector<8x128xf32>
    %cst_11 = arith.constant 1.000000e+00 : f32
    %14 = vector.broadcast %cst_11 : f32 to vector<8x128xf32>
    %15 = arith.cmpf oeq, %0, %14 : vector<8x128xf32>
    %cst_12 = arith.constant -1.000000e+02 : f32
    %16 = vector.broadcast %cst_12 : f32 to vector<8x128xf32>
    %17 = arith.select %15, %16, %13 : vector<8x128xi1>, vector<8x128xf32>
    %c0_13 = arith.constant 0 : index
    %c0_14 = arith.constant 0 : index
    %18 = vector.load %arg6[%c0_13, %c0_14] : memref<8x128xf32, #tpu.memory_space<vmem>>, vector<8x128xf32>
    tpu.vector_store %arg6[%c0_13, %c0_14], %17 {strides = array<i32>} : memref<8x128xf32, #tpu.memory_space<vmem>>, vector<8x128xf32>,
    return
  }
  func.func @transform_0(%arg0: i32) -> (i32, i32) {
    %c0_i32 = arith.constant 0 : i32
    %c0_i32_0 = arith.constant 0 : i32
    return %arg0, %c0_i32 : i32, i32
  }
  func.func @transform_1(%arg0: i32) -> (i32, i32) {
    %c0_i32 = arith.constant 0 : i32
    %c0_i32_0 = arith.constant 0 : i32
    %c0_i32_1 = arith.constant 0 : i32
    return %c0_i32, %c0_i32_0 : i32, i32
  }
  func.func @transform_2(%arg0: i32) -> (i32, i32) {
    %c0_i32 = arith.constant 0 : i32
    %c0_i32_0 = arith.constant 0 : i32
    %c0_i32_1 = arith.constant 0 : i32
    return %c0_i32, %c0_i32_0 : i32, i32
  }
  func.func @transform_3(%arg0: i32) -> (i32, i32) {
    %c0_i32 = arith.constant 0 : i32
    %c0_i32_0 = arith.constant 0 : i32
    %c0_i32_1 = arith.constant 0 : i32
    return %c0_i32, %c0_i32_0 : i32, i32
  }
  func.func @transform_4(%arg0: i32) -> (i32, i32) {
    %c0_i32 = arith.constant 0 : i32
    %c0_i32_0 = arith.constant 0 : i32
    %c0_i32_1 = arith.constant 0 : i32
    return %c0_i32, %c0_i32_0 : i32, i32
  }
  func.func @transform_5(%arg0: i32) -> (i32, i32) {
    %c0_i32 = arith.constant 0 : i32
    %c0_i32_0 = arith.constant 0 : i32
    return %arg0, %c0_i32 : i32, i32
  }
}

</mosaic_0001>

<bundles_post_ra>
// kernel: tpu_custom_call.1
= control target key start
LH: loop header
LB: loop body
LE: loop exit
PB: predicated region body
PF: predicated region fallthrough
CT: control target
= control target key end

     0   :  { %v348_v3 = vmov 0.0|0.0   ;;  %vm349_vm0 = vmmov 0   ;;  %v350_v6 = vmov 0.0   ;;  %s463_s0 = inlined_call_operand.vmem [shape: f32[8,128], index: 0, kind: input, shape index: {}]   ;;  %s464_s1 = inlined_call_operand.vmem [shape: f32[128,32], index: 1, kind: input, shape index: {}]   ;;  %s465_s2 = inlined_call_operand.vmem [shape: f32[1,32], index: 2, kind: input, shape index: {}]   ;;  %s466_s3 = inlined_call_operand.vmem [shape: f32[32,128], index: 3, kind: input, shape index: {}]   ;;  %s467_s4 = inlined_call_operand.vmem [shape: f32[1,128], index: 4, kind: input, shape index: {}]   ;;  %s468_s5 = inlined_call_operand.hbm [shape: f32[8,128], index: 5, kind: output, shape index: {}]  }
   0x1   :  { %v22_v0 = vld [vmem:[%s464_s1] sm:$0xff]  ;;  %v23_v1 = vld [vmem:[%s464_s1 + $0x8] sm:$0xff]  ;;  %v24_v2 = vld [vmem:[%s464_s1 + $0x10] sm:$0xff]  ;;  %290 = vmatprep.subr.bf16.mxu0 %v348_v3  ;;  %276 = vmatprep.mubr.msk.f32.mxu0 %vm349_vm0, %v350_v6 }
   0x2   :  { %v291_v4 = vpack.c.bf16 %v23_v1, %v22_v0  ;;  %v25_v5 = vld [vmem:[%s464_s1 + $0x18] sm:$0xff]  ;;  %314 = vmatprep.subr.bf16.mxu1 %v348_v3  ;;  %287 = vmatprep.mubr.msk.f32.mxu1 %vm349_vm0, %v350_v6  ;;  %v26_v8 = vld [vmem:[%s464_s1 + $0x20] sm:$0xff]  ;;  %v27_v9 = vld [vmem:[%s464_s1 + $0x28] sm:$0xff] }
   0x3   :  { %v294_v7 = vpack.c.bf16 %v25_v5, %v24_v2 }
   0x4   :  { %292 = vmatpush3.bf16.msra.mxu0 %v291_v4 }
   0x5   :  { %293 = vmatprep.subr.bf16.mxu0 %v348_v3 }
   0x6   :  { %10 = vsyncpa [#allocation3], 0  ;;  %v297_v10 = vpack.c.bf16 %v27_v9, %v26_v8  ;;  %v28_v11 = vld [vmem:[%s464_s1 + $0x30] sm:$0xff]  ;;  %v29_v12 = vld [vmem:[%s464_s1 + $0x38] sm:$0xff]  ;;  %vm128_vm1 = vcmask 261120   ;;  %s351_s12 = smov [#allocation2]  }
   0x7   :  { %v300_v13 = vpack.c.bf16 %v29_v12, %v28_v11  ;;  %v30_v14 = vld [vmem:[%s464_s1 + $0x40] sm:$0xff]  ;;  %v31_v15 = vld [vmem:[%s464_s1 + $0x48] sm:$0xff]  ;;  %v32_v17 = vld [vmem:[%s464_s1 + $0x50] sm:$0xff]  ;;  %s211_s13 = sshll.u32 %s351_s12, 4  ;;  %s212_s13 = int_to_ptr.vmem [resolvable:$true] %s211_s13 }
   0x8   :  { %295 = vmatpush3.bf16.msra.mxu0 %v294_v7  ;;  %v303_v16 = vpack.c.bf16 %v31_v15, %v30_v14  ;;  %v33_v18 = vld [vmem:[%s464_s1 + $0x58] sm:$0xff]  ;;  %v34_v20 = vld [vmem:[%s464_s1 + $0x60] sm:$0xff]  ;;  %v35_v21 = vld [vmem:[%s464_s1 + $0x68] sm:$0xff]  ;;  %p329_p1 = scmp.lt.s32.totalorder %s212_s13, %s212_s13 }
   0x9   :  { %296 = vmatprep.subr.bf16.mxu0 %v348_v3  ;;  %v306_v19 = vpack.c.bf16 %v33_v18, %v32_v17  ;;  %v309_v22 = vpack.c.bf16 %v35_v21, %v34_v20  ;;  %v36_v23 = vld [vmem:[%s464_s1 + $0x70] sm:$0xff]  ;;  %v37_v24 = vld [vmem:[%s464_s1 + $0x78] sm:$0xff]  ;;  %v21_v26 = vld [vmem:[%s463_s0] sm:$0xff] }
   0xa   :  { %v312_v25 = vpack.c.bf16 %v37_v24, %v36_v23  ;;  %v117_v27 = vld [vmem:[%s466_s3] sm:$0xff]  ;;  %v118_v28 = vld [vmem:[%s466_s3 + $0x8] sm:$0xff]  ;;  %v119_v30 = vld [vmem:[%s466_s3 + $0x10] sm:$0xff]  ;;  %vm202_vm2 = vcmp.eq.f32.partialorder %v21_v26, 1.0 }
   0xb   :  { %v315_v29 = vpack.c.bf16 %v118_v28, %v117_v27  ;;  %v120_v31 = vld [vmem:[%s466_s3 + $0x18] sm:$0xff]  ;;  %v219_v33 = vld [vmem:[%s465_s2] ss:$0 sm:$0xff]  ;;  %s324_s2 = scalar_lea.vmem %s212_s13, 128 }
   0xc   :  { %298 = vmatpush3.bf16.msra.mxu0 %v297_v10  ;;  %v318_v32 = vpack.c.bf16 %v120_v31, %v119_v30  ;;  %v220_v39 = vld [vmem:[%s467_s4] ss:$0 sm:$0xff]  ;;  %p325_p0 = scmp.ne.s32.totalorder %s212_s13, %s324_s2  ;;  %p330_p2 = scmp.lt.s32.totalorder %s324_s2, %s324_s2 }
   0xd   :  { %299 = vmatprep.subr.bf16.mxu0 %v348_v3  ;;  %316 = vmatpush3.bf16.msra.mxu1 %v315_v29 }
   0xe   :  { %317 = vmatprep.subr.bf16.mxu1 %v348_v3  ;;  %p331_p3 = por %p330_p2, %p329_p1 }
  0x10   :  { %301 = vmatpush3.bf16.msra.mxu0 %v300_v13  ;;  %p332_p4 = pnand %p331_p3, %p325_p0 }
  0x11   :  { %302 = vmatprep.subr.bf16.mxu0 %v348_v3  ;;  %319 = vmatpush3.bf16.msra.mxu1 %v318_v32 }
  0x14   :  { %304 = vmatpush3.bf16.msra.mxu0 %v303_v16 }
  0x15   :  { %305 = vmatprep.subr.bf16.mxu0 %v348_v3 }
  0x18   :  { %307 = vmatpush3.bf16.msra.mxu0 %v306_v19 }
  0x19   :  { %308 = vmatprep.subr.bf16.mxu0 %v348_v3 }
  0x1c   :  { %310 = vmatpush3.bf16.msra.mxu0 %v309_v22 }
  0x1d   :  { %311 = vmatprep.subr.bf16.mxu0 %v348_v3 }
  0x20   :  { %313 = vmatpush3.bf16.msra.mxu0 %v312_v25 }
  0x23   :  { %277 = vmatmul.mubr.f32.vlgmr.msra.gmra.mrb[0].mxu0 %v21_v26 }
  0xf6   :  { %v111_v34 = vpop.f32.mrb[0].mxu0 }
  0xf7   :  { %v112_v35 = vadd.f32 %v219_v33, %v111_v34  ;;  %v278_v36 = vpop.f32.mrb[1].mxu0 }
  0xf9   :  { %v115_v37 = vmul.f32 0.01, %v112_v35 }
  0xfb   :  { %v116_v38 = vmax.f32 %v112_v35, %v115_v37 }
  0xfd   :  { %288 = vmatmul.mubr.msk.f32.vlgmr.msra.gmra.mrb[0].mxu1 %vm128_vm1, %v116_v38 }
 0x1d0   :  { %v198_v40 = vpop.f32.mrb[0].mxu1 }
 0x1d1   :  { %v199_v41 = vadd.f32 %v220_v39, %v198_v40  ;;  %v289_v42 = vpop.f32.mrb[1].mxu1 }
 0x1d3   :  { %v203_v43 = vsel %vm202_vm2, -100.0, %v199_v41 }
 0x1d4   :  { %204 = vst [vmem:[#allocation2] sm:$0xff] %v203_v43 }
 0x1d5   :  { %335 = shalt.err (!%p332_p4)
}
 0x1d6   :  { %s336_s4 = scalar_lea.hbm %s468_s5, 128 }
 0x1d7   :  { %p337_p5 = scmp.ne.s32.totalorder %s468_s5, %s336_s4  ;;  %p340_p6 = scmp.lt.u32.totalorder %s336_s4, %s468_s5 }
 0x1d9   :  { %p342_p7 = pnand %p340_p6, %p337_p5 }
 0x1db   :  { %345 = shalt.err (!%p342_p7)
}
 0x1dc   :  { %214 = dma.vmem_to_hbm [thread:$0]  %s212_s13, 128, %s468_s5, [#allocation3]  }
 0x1dd   :  { %346 = dma.done.wait [#allocation3], 128  }
 0x1de   :  { %347 = vsyncadd [#allocation3], 4294967168 }
 0x1df   :  { %218 = vsyncpa [#allocation3], 1 }

</bundles_post_ra>
